<compile_context>
chip_gen: v7x
topology: tpu7x:2x2x1
jax: 0.10.0
libtpu: 0.0.40
codegen_flags: <defaults>
</compile_context>

<pallas_src>
import functools

import jax
import jax.numpy as jnp
import numpy as np
from jax.experimental import pallas as pl
from jax.experimental.pallas import tpu as pltpu

_SQRT2 = 1.4142135623730951


def _erf(x):
    # Abramowitz & Stegun 7.1.26 rational approximation (max abs err ~1.5e-7,
    # i.e. f32-level accuracy).  The single divide is replaced by an EUP
    # approximate reciprocal + one Newton-Raphson refinement so the whole erf
    # is exp (EUP slot) + cheap VPU mul/add/select.
    a1, a2, a3, a4, a5 = (0.254829592, -0.284496736, 1.421413741,
                          -1.453152027, 1.061405429)
    p = 0.3275911
    ax = jnp.abs(x)
    d = 1.0 + p * ax
    r = pl.reciprocal(d, approx=True)
    r = r * (2.0 - d * r)          # one NR step -> ~1e-7 relative error
    t = r
    poly = ((((a5 * t + a4) * t + a3) * t + a2) * t + a1) * t
    y = 1.0 - poly * jnp.exp(-ax * ax)
    return jnp.where(x >= 0.0, y, -y)


def _gelu(x):
    # Exact (erf-based) GELU, matching torch.nn.GELU(approximate='none').
    return 0.5 * x * (1.0 + _erf(x / _SQRT2))


# ---------------------------------------------------------------------------
# Pallas kernel: fused  y = W2 @ gelu(W1 @ x + b1) + b2  on one spatial tile.
# ---------------------------------------------------------------------------
def _fused_mlp_kernel(x_ref, w1_ref, b1_ref, w2_ref, b2_ref, o_ref):
    # x_ref : (Cin,  S_tile)   pixels on the 128-lane axis
    # w1_ref: (Cmid, Cin)      b1_ref: (Cmid, 1)
    # w2_ref: (Cout, Cmid)     b2_ref: (Cout, 1)
    # o_ref : (Cout, S_tile)
    x = x_ref[...]
    h = jnp.dot(w1_ref[...], x,
                preferred_element_type=jnp.float32) + b1_ref[...]
    h = _gelu(h)
    y = jnp.dot(w2_ref[...], h,
                preferred_element_type=jnp.float32) + b2_ref[...]
    o_ref[...] = y.astype(o_ref.dtype)


# ---------------------------------------------------------------------------
# Wrapper
# ---------------------------------------------------------------------------
def mlp_forward(x, w1, b1, w2, b2, *, tile=32768):
    """Fused 1x1-conv MLP, NCHW in / NCHW out.

    x : (B, Cin, H, W) float32
    w1: (Cmid, Cin),  b1: (Cmid,)     (torch Conv2d weight orientation)
    w2: (Cout, Cmid), b2: (Cout,)
    returns (B, Cout, H, W) float32
    """
    B, Cin, H, W = x.shape
    Cmid = w1.shape[0]
    Cout = w2.shape[0]
    S = H * W

    # NCHW's last two dims are contiguous -> free reshape, no HBM copy.
    x3d = x.reshape(B, Cin, S)

    # Spatial tile: big lane-dense blocks (multiple of 128).  Fall back to the
    # full spatial extent when S is small or not a multiple of 128 (a block
    # equal to the full array dim is exempt from the (8,128) rule).  Ragged
    # edge blocks (cdiv grid) are safe: the compute is per-pixel-column, so
    # garbage in padded columns never touches valid output columns and their
    # writes are masked out.
    tile = int(tile)
    if S % 128 == 0 and S > tile:
        tile_s = max(128, (tile // 128) * 128)
    else:
        tile_s = S
    ns = pl.cdiv(S, tile_s)
    grid = (B, ns)

    b1c = b1.reshape(Cmid, 1)
    b2c = b2.reshape(Cout, 1)

    # VMEM budget: double-buffered in/out tiles + hidden activation + weights,
    # with 2x margin; capped at 48 MiB (v7x has 64 MiB per TensorCore).
    f32 = 4
    need = 2 * tile_s * (Cin + Cout) * f32            # pipelined in/out blocks
    need += 2 * Cmid * tile_s * f32                   # hidden activation
    need += 2 * (Cmid * Cin + Cout * Cmid + Cmid + Cout) * f32
    vmem_limit = int(min(max(2 * need, 8 << 20), 48 << 20))

    flops = 2 * B * S * (Cin * Cmid + Cmid * Cout)
    bytes_accessed = f32 * (B * S * (Cin + Cout)
                            + Cmid * Cin + Cout * Cmid + Cmid + Cout)
    cost = pl.CostEstimate(flops=flops,
                           transcendentals=B * S * Cmid,
                           bytes_accessed=bytes_accessed)

    out = pl.pallas_call(
        _fused_mlp_kernel,
        out_shape=jax.ShapeDtypeStruct((B, Cout, S), jnp.float32),
        grid=grid,
        in_specs=[
            pl.BlockSpec((None, Cin, tile_s), lambda b, s: (b, 0, s)),
            pl.BlockSpec((Cmid, Cin), lambda b, s: (0, 0)),
            pl.BlockSpec((Cmid, 1), lambda b, s: (0, 0)),
            pl.BlockSpec((Cout, Cmid), lambda b, s: (0, 0)),
            pl.BlockSpec((Cout, 1), lambda b, s: (0, 0)),
        ],
        out_specs=pl.BlockSpec((None, Cout, tile_s), lambda b, s: (b, 0, s)),
        compiler_params=pltpu.CompilerParams(
            dimension_semantics=("parallel", "parallel"),
            vmem_limit_bytes=vmem_limit),
        cost_estimate=cost,
    )(x3d, w1, b1c, w2, b2c)

    # Free reshape back to NCHW.
    return out.reshape(B, Cout, H, W)


# ---------------------------------------------------------------------------
# Deterministic parameters (match nn.Conv2d(k=1) default init) + reference.
# ---------------------------------------------------------------------------
def init_params(key, cin, cmid, cout):
    k1, k2, k3, k4 = jax.random.split(key, 4)
    b1v = 1.0 / float(np.sqrt(cin))
    b2v = 1.0 / float(np.sqrt(cmid))
    w1 = jax.random.uniform(k1, (cmid, cin), jnp.float32, -b1v, b1v)
    bb1 = jax.random.uniform(k2, (cmid,), jnp.float32, -b1v, b1v)
    w2 = jax.random.uniform(k3, (cout, cmid), jnp.float32, -b2v, b2v)
    bb2 = jax.random.uniform(k4, (cout,), jnp.float32, -b2v, b2v)
    return w1, bb1, w2, bb2


def _reference(x, w1, b1, w2, b2):
    # Pure-JAX reference of the torch module (exact erf GELU).
    h = jnp.einsum("mc,bchw->bmhw", w1, x) + b1[None, :, None, None]
    h = jax.nn.gelu(h, approximate=False)
    return jnp.einsum("om,bmhw->bohw", w2, h) + b2[None, :, None, None]


if __name__ == "__main__":
    B, Cin, Cmid, Cout, H, W = 2, 4, 32, 4, 16, 16
    key = jax.random.PRNGKey(0)
    kx, kp = jax.random.split(key)
    x = jax.random.normal(kx, (B, Cin, H, W), jnp.float32)
    w1, b1, w2, b2 = init_params(kp, Cin, Cmid, Cout)

    fwd = jax.jit(functools.partial(mlp_forward, tile=32768))
    y = fwd(x, w1, b1, w2, b2)
    jax.block_until_ready(y)

    assert y.shape == (B, Cout, H, W) and y.dtype == jnp.float32
    y_ref = _reference(x, w1, b1, w2, b2)
    err = float(jnp.max(jnp.abs(y - y_ref)))
    assert err < 1e-4, f"max abs err vs reference = {err}"
    print("KERNEL_OK")
</pallas_src>

<mosaic_0001>
module attributes {stable_mosaic.version = 11 : i64} {
  func.func @_fused_mlp_kernel(%arg0: i32, %arg1: i32, %arg2: memref<1x4x256xf32, #tpu.memory_space<vmem>>, %arg3: memref<32x4xf32, #tpu.memory_space<vmem>>, %arg4: memref<32x1xf32, #tpu.memory_space<vmem>>, %arg5: memref<4x32xf32, #tpu.memory_space<vmem>>, %arg6: memref<4x1xf32, #tpu.memory_space<vmem>>, %arg7: memref<1x4x256xf32, #tpu.memory_space<vmem>>) attributes {dimension_semantics = [#tpu.dimension_semantics<parallel>, #tpu.dimension_semantics<parallel>], iteration_bounds = array<i64: 2, 1>, scalar_prefetch = 0 : i64, scratch_operands = 0 : i64, tpu.core_type = #tpu.core_type<tc>, window_params = [{transform_indices = @transform_0, window_bounds = array<i64: 1, 4, 256>}, {pipeline_mode = #tpu.pipeline_mode<synchronous>, transform_indices = @transform_1, window_bounds = array<i64: 32, 4>}, {pipeline_mode = #tpu.pipeline_mode<synchronous>, transform_indices = @transform_2, window_bounds = array<i64: 32, 1>}, {pipeline_mode = #tpu.pipeline_mode<synchronous>, transform_indices = @transform_3, window_bounds = array<i64: 4, 32>}, {pipeline_mode = #tpu.pipeline_mode<synchronous>, transform_indices = @transform_4, window_bounds = array<i64: 4, 1>}, {transform_indices = @transform_5, window_bounds = array<i64: 1, 4, 256>}]} {
    %c0 = arith.constant 0 : index
    %c0_0 = arith.constant 0 : index
    %c0_1 = arith.constant 0 : index
    %0 = vector.load %arg2[%c0, %c0_0, %c0_1] : memref<1x4x256xf32, #tpu.memory_space<vmem>>, vector<1x4x256xf32>
    %1 = vector.shape_cast %0 : vector<1x4x256xf32> to vector<4x256xf32>
    %c0_2 = arith.constant 0 : index
    %c0_3 = arith.constant 0 : index
    %2 = vector.load %arg3[%c0_2, %c0_3] : memref<32x4xf32, #tpu.memory_space<vmem>>, vector<32x4xf32>
    %cst = arith.constant dense<0.000000e+00> : vector<32x256xf32>
    %3 = tpu.matmul %2, %1, %cst {dimension_numbers = #tpu.dot_dimension_numbers<[1], [0], [0], [1], [0, 0, 1, 1], [], []>} : vector<32x4xf32>, vector<4x256xf32>, vector<32x256xf32> -> vector<32x256xf32>
    %c0_4 = arith.constant 0 : index
    %c0_5 = arith.constant 0 : index
    %4 = vector.load %arg4[%c0_4, %c0_5] : memref<32x1xf32, #tpu.memory_space<vmem>>, vector<32x1xf32>
    %5 = vector.broadcast %4 : vector<32x1xf32> to vector<32x256xf32>
    %6 = arith.addf %3, %5 : vector<32x256xf32>
    %cst_6 = arith.constant 5.000000e-01 : f32
    %7 = vector.broadcast %cst_6 : f32 to vector<32x256xf32>
    %8 = arith.mulf %7, %6 : vector<32x256xf32>
    %cst_7 = arith.constant 1.41421354 : f32
    %9 = vector.broadcast %cst_7 : f32 to vector<32x256xf32>
    %10 = arith.divf %6, %9 : vector<32x256xf32>
    %11 = math.absf %10 : vector<32x256xf32>
    %cst_8 = arith.constant 0.327591091 : f32
    %12 = vector.broadcast %cst_8 : f32 to vector<32x256xf32>
    %13 = arith.mulf %12, %11 : vector<32x256xf32>
    %cst_9 = arith.constant 1.000000e+00 : f32
    %14 = vector.broadcast %cst_9 : f32 to vector<32x256xf32>
    %15 = arith.addf %14, %13 : vector<32x256xf32>
    %16 = tpu.reciprocal %15 {approx = true} : vector<32x256xf32> -> vector<32x256xf32>
    %17 = arith.mulf %15, %16 : vector<32x256xf32>
    %cst_10 = arith.constant 2.000000e+00 : f32
    %18 = vector.broadcast %cst_10 : f32 to vector<32x256xf32>
    %19 = arith.subf %18, %17 : vector<32x256xf32>
    %20 = arith.mulf %16, %19 : vector<32x256xf32>
    %cst_11 = arith.constant 1.06140542 : f32
    %21 = vector.broadcast %cst_11 : f32 to vector<32x256xf32>
    %22 = arith.mulf %21, %20 : vector<32x256xf32>
    %cst_12 = arith.constant -1.45315206 : f32
    %23 = vector.broadcast %cst_12 : f32 to vector<32x256xf32>
    %24 = arith.addf %22, %23 : vector<32x256xf32>
    %25 = arith.mulf %24, %20 : vector<32x256xf32>
    %cst_13 = arith.constant 1.42141378 : f32
    %26 = vector.broadcast %cst_13 : f32 to vector<32x256xf32>
    %27 = arith.addf %25, %26 : vector<32x256xf32>
    %28 = arith.mulf %27, %20 : vector<32x256xf32>
    %cst_14 = arith.constant -0.284496725 : f32
    %29 = vector.broadcast %cst_14 : f32 to vector<32x256xf32>
    %30 = arith.addf %28, %29 : vector<32x256xf32>
    %31 = arith.mulf %30, %20 : vector<32x256xf32>
    %cst_15 = arith.constant 0.254829586 : f32
    %32 = vector.broadcast %cst_15 : f32 to vector<32x256xf32>
    %33 = arith.addf %31, %32 : vector<32x256xf32>
    %34 = arith.mulf %33, %20 : vector<32x256xf32>
    %cst_16 = arith.constant 0.000000e+00 : f32
    %35 = vector.broadcast %cst_16 : f32 to vector<32x256xf32>
    %36 = arith.subf %35, %11 : vector<32x256xf32>
    %37 = arith.mulf %36, %11 : vector<32x256xf32>
    %38 = math.exp %37 : vector<32x256xf32>
    %39 = arith.mulf %34, %38 : vector<32x256xf32>
    %cst_17 = arith.constant 1.000000e+00 : f32
    %40 = vector.broadcast %cst_17 : f32 to vector<32x256xf32>
    %41 = arith.subf %40, %39 : vector<32x256xf32>
    %cst_18 = arith.constant 0.000000e+00 : f32
    %42 = vector.broadcast %cst_18 : f32 to vector<32x256xf32>
    %43 = arith.cmpf oge, %10, %42 : vector<32x256xf32>
    %cst_19 = arith.constant 0.000000e+00 : f32
    %44 = vector.broadcast %cst_19 : f32 to vector<32x256xf32>
    %45 = arith.subf %44, %41 : vector<32x256xf32>
    %46 = arith.select %43, %41, %45 : vector<32x256xi1>, vector<32x256xf32>
    %cst_20 = arith.constant 1.000000e+00 : f32
    %47 = vector.broadcast %cst_20 : f32 to vector<32x256xf32>
    %48 = arith.addf %47, %46 : vector<32x256xf32>
    %49 = arith.mulf %8, %48 : vector<32x256xf32>
    %c0_21 = arith.constant 0 : index
    %c0_22 = arith.constant 0 : index
    %50 = vector.load %arg5[%c0_21, %c0_22] : memref<4x32xf32, #tpu.memory_space<vmem>>, vector<4x32xf32>
    %cst_23 = arith.constant dense<0.000000e+00> : vector<4x256xf32>
    %51 = tpu.matmul %50, %49, %cst_23 {dimension_numbers = #tpu.dot_dimension_numbers<[1], [0], [0], [1], [0, 0, 1, 1], [], []>} : vector<4x32xf32>, vector<32x256xf32>, vector<4x256xf32> -> vector<4x256xf32>
    %c0_24 = arith.constant 0 : index
    %c0_25 = arith.constant 0 : index
    %52 = vector.load %arg6[%c0_24, %c0_25] : memref<4x1xf32, #tpu.memory_space<vmem>>, vector<4x1xf32>
    %53 = vector.broadcast %52 : vector<4x1xf32> to vector<4x256xf32>
    %54 = arith.addf %51, %53 : vector<4x256xf32>
    %c0_26 = arith.constant 0 : index
    %c0_27 = arith.constant 0 : index
    %c0_28 = arith.constant 0 : index
    %55 = vector.load %arg7[%c0_26, %c0_27, %c0_28] : memref<1x4x256xf32, #tpu.memory_space<vmem>>, vector<1x4x256xf32>
    %56 = vector.shape_cast %55 : vector<1x4x256xf32> to vector<4x256xf32>
    %57 = vector.shape_cast %54 : vector<4x256xf32> to vector<1x4x256xf32>
    tpu.vector_store %arg7[%c0_26, %c0_27, %c0_28], %57 {strides = array<i32>} : memref<1x4x256xf32, #tpu.memory_space<vmem>>, vector<1x4x256xf32>,
    return
  }
  func.func @transform_0(%arg0: i32, %arg1: i32) -> (i32, i32, i32) {
    %c0_i32 = arith.constant 0 : i32
    %c0_i32_0 = arith.constant 0 : i32
    return %arg0, %c0_i32, %arg1 : i32, i32, i32
  }
  func.func @transform_1(%arg0: i32, %arg1: i32) -> (i32, i32) {
    %c0_i32 = arith.constant 0 : i32
    %c0_i32_0 = arith.constant 0 : i32
    %c0_i32_1 = arith.constant 0 : i32
    return %c0_i32, %c0_i32_0 : i32, i32
  }
  func.func @transform_2(%arg0: i32, %arg1: i32) -> (i32, i32) {
    %c0_i32 = arith.constant 0 : i32
    %c0_i32_0 = arith.constant 0 : i32
    %c0_i32_1 = arith.constant 0 : i32
    return %c0_i32, %c0_i32_0 : i32, i32
  }
  func.func @transform_3(%arg0: i32, %arg1: i32) -> (i32, i32) {
    %c0_i32 = arith.constant 0 : i32
    %c0_i32_0 = arith.constant 0 : i32
    %c0_i32_1 = arith.constant 0 : i32
    return %c0_i32, %c0_i32_0 : i32, i32
  }
  func.func @transform_4(%arg0: i32, %arg1: i32) -> (i32, i32) {
    %c0_i32 = arith.constant 0 : i32
    %c0_i32_0 = arith.constant 0 : i32
    %c0_i32_1 = arith.constant 0 : i32
    return %c0_i32, %c0_i32_0 : i32, i32
  }
  func.func @transform_5(%arg0: i32, %arg1: i32) -> (i32, i32, i32) {
    %c0_i32 = arith.constant 0 : i32
    %c0_i32_0 = arith.constant 0 : i32
    return %arg0, %c0_i32, %arg1 : i32, i32, i32
  }
}

</mosaic_0001>

<bundles_post_ra>
// kernel: mlp_forward.1
= control target key start
LH: loop header
LB: loop body
LE: loop exit
PB: predicated region body
PF: predicated region fallthrough
CT: control target
= control target key end

     0   :  { %s954_s18 = smov 0   ;;  %s956_s19 = smov 0   ;;  %s1149_s0 = inlined_call_operand.vmem [shape: f32[2,4,256], index: 0, kind: input, shape index: {}]   ;;  %s1150_s1 = inlined_call_operand.vmem [shape: f32[32,4], index: 1, kind: input, shape index: {}]   ;;  %s1151_s2 = inlined_call_operand.vmem [shape: f32[32,1], index: 2, kind: input, shape index: {}]   ;;  %s1152_s3 = inlined_call_operand.vmem [shape: f32[4,32], index: 3, kind: input, shape index: {}]   ;;  %s1153_s4 = inlined_call_operand.vmem [shape: f32[4,1], index: 4, kind: input, shape index: {}]   ;;  %s1154_s5 = inlined_call_operand.vmem [shape: f32[2,4,256], index: 5, kind: output, shape index: {}]  }
   0x1   :  { %s958_s20 = smov 0  }
   0x2 LB: > { %s27_s21 = sadd.s32 1, %s916_s19  ;;  %p813_p0 = scmp.ge.s32.totalorder %s920_s20, 1  ;;  %s920_s20 = sphi %s958_s20, %s15_s20   ;;  %s916_s19 = sphi %s956_s19, %s1156_s19   ;;  %s912_s18 = sphi %s954_s18, %s1155_s18  }
   0x3   : > { %p29_p1 = scmp.ge.s32.totalorder %s27_s21, 2  ;;  %p208_p2 = scmp.lt.s32.totalorder %s920_s20, 3 }
   0x5   : > { %s1158_s21 = smov (%p29_p1, %s27_s21), 0  ;;  %p209_p3 = pnand %p813_p0, %p208_p2 }
   0x6   : > { %p245_p4 = scmp.lt.s32.totalorder (!%p209_p3), %s912_s18, 1  ;;  %v922_v0 = vmov (!%p209_p3), 0.0   ;;  %v269_v1 = vld [vmem:[%s1151_s2] sm:$0xff] (!%p209_p3)  ;;  %v923_v2 = vmov (!%p209_p3), 0   ;;  %v271_v3 = vld [vmem:[%s1151_s2 + $0x10] sm:$0xff] (!%p209_p3)  ;;  %v270_v4 = vld [vmem:[%s1151_s2 + $0x8] sm:$0xff] (!%p209_p3) }
   0x7   : > { %212 = sbr.rel (%p209_p3) target bundleno = 530 (0x212), region = 40  ;;  %377 = vmatprep.mubr.f32.mxu0 (!%p209_p3), %v922_v0  ;;  %710 = vmatprep.mubr.f32.mxu1 (!%p209_p3), %v922_v0  ;;  %v272_v5 = vld [vmem:[%s1151_s2 + $0x18] sm:$0xff] (!%p209_p3)  ;;  %vm308_vm0 = vcmask (!%p209_p3), 1043456   ;;  %v265_v8 = vld [vmem:[%s1150_s1] sm:$0xff] (!%p209_p3)  ;;  %vm295_vm1 = vcmask (!%p209_p3), 31744   ;;  %v266_v10 = vld [vmem:[%s1150_s1 + $0x8] sm:$0xff] (!%p209_p3) }
   0x8   : > { %863 = vset.pattern.permute.xlu0 (!%p209_p3), %v923_v2  ;;  %864 = vset.pattern.permute.xlu1 (!%p209_p3), %v923_v2  ;;  %v636_v9 = vld [vmem:[%s1153_s4] sm:$0xf] (!%p209_p3)  ;;  %v267_v11 = vld [vmem:[%s1150_s1 + $0x10] sm:$0xff] (!%p209_p3)  ;;  %v268_v12 = vld [vmem:[%s1150_s1 + $0x18] sm:$0xff] (!%p209_p3)  ;;  %vm642_vm10 = vcmask (!%p209_p3), 261120  }
   0x9   : > { %275 = vperm.xlu0 (!%p209_p3), %863, %v269_v1   ;;  %285 = vperm.xlu1 (!%p209_p3), %864, %v271_v3  }
   0xd   : > { %280 = vperm.xlu0 (!%p209_p3), %863, %v270_v4   ;;  %290 = vperm.xlu1 (!%p209_p3), %864, %v272_v5  }
   0xe   : > { %s1160_s18 = smov (!%p245_p4, %s912_s18), 1 }
   0xf   : > { %s827_s26 = sshll.u32 %s1160_s18, 3 }
  0x10   : > { %s252_s8 = scalar_lea.vmem %s1149_s0, %s827_s26  ;;  %s262_s28 = scalar_lea.vmem %s1154_s5, %s827_s26 }
  0x11   : > { %v264_v6 = vld [vmem:[%s252_s8] sm:$0xff]  ;;  %639 = vperm.xlu0 %863, %v636_v9  }
  0x12   : > { %v294_v7 = vcombine.high %v264_v6, %v264_v6 }
  0x14   : > { %818 = vmatprep.subr.msk.mxu0 %vm308_vm0, %v294_v7 }
  0x15   : > { %819 = vmatpush1.msk.msra.mxu0 %vm308_vm0, %v264_v6 }
  0x16   : > { %820 = vmatmul.mubr.msk.f32.vlgmr.msra.gmra.mrb[0].mxu0 %vm295_vm1, %v265_v8 }
  0x17   : > { %383 = vmatprep.mubr.f32.mxu0 %v922_v0 }
  0x1a   : > { %821 = vmatmul.mubr.msk.f32.gmra.mrb[2].mxu0 %vm295_vm1, %v266_v10 }
  0x1b   : > { %389 = vmatprep.mubr.f32.mxu0 %v922_v0 }
  0x1e   : > { %822 = vmatmul.mubr.msk.f32.gmra.mrb[4].mxu0 %vm295_vm1, %v267_v11 }
  0x1f   : > { %395 = vmatprep.mubr.f32.mxu0 %v922_v0 }
  0x22   : > { %823 = vmatmul.mubr.msk.f32.gmra.mrb[6].mxu0 %vm295_vm1, %v268_v12 }
  0x88   : > { %v276_v13 = vpop.permute.xlu0 %275  ;;  %v286_v35 = vpop.permute.xlu1 %285 }
  0x8c   : > { %v281_v19 = vpop.permute.xlu0 %280  ;;  %v291_v48 = vpop.permute.xlu1 %290 }
  0xe9   : > { %v379_v14 = vpop.f32.mrb[0].mxu0 }
  0xea   : > { %v380_v15 = vadd.f32 %v379_v14, %v276_v13  ;;  %v381_v16 = vpop.f32.mrb[1].mxu0 }
  0xeb   : > { %v382_v17 = vadd.f32 %v381_v16, %v276_v13 }
  0xec   : > { %v1007_v18 = vmul.f32 0.70710677, %v380_v15  ;;  %v1032_v54 = vmul.f32 0.5, %v380_v15 }
  0xed   : > { %v1009_v20 = vmul.f32 0.70710677, %v382_v17  ;;  %v385_v21 = vpop.f32.mrb[2].mxu0  ;;  %v1034_v55 = vmul.f32 0.5, %v382_v17 }
  0xee   : > { %v419_v22 = vand.u32 2147483647, %v1007_v18  ;;  %v386_v23 = vadd.f32 %v385_v21, %v281_v19  ;;  %v387_v24 = vpop.f32.mrb[3].mxu0  ;;  %vm595_vm3 = vcmp.ge.f32.partialorder %v1007_v18, 0.0 }
  0xef   : > { %v420_v25 = vand.u32 2147483647, %v1009_v20  ;;  %v388_v26 = vadd.f32 %v387_v24, %v281_v19  ;;  %vm596_vm2 = vcmp.ge.f32.partialorder %v1009_v20, 0.0 }
  0xf0   : > { %v427_v27 = vmul.f32 0.3275911, %v419_v22  ;;  %v1013_v28 = vmul.f32 0.70710677, %v386_v23  ;;  %v547_v46 = vsub.f32 0.0, %v419_v22  ;;  %v1039_v59 = vmul.f32 0.5, %v386_v23 }
  0xf1   : > { %v428_v29 = vmul.f32 0.3275911, %v420_v25  ;;  %v1015_v30 = vmul.f32 0.70710677, %v388_v26  ;;  %v391_v33 = vpop.f32.mrb[4].mxu0  ;;  %v548_v50 = vsub.f32 0.0, %v420_v25 }
  0xf2   : > { %v435_v31 = vadd.f32 1.0, %v427_v27  ;;  %v421_v32 = vand.u32 2147483647, %v1013_v28  ;;  %v393_v37 = vpop.f32.mrb[5].mxu0  ;;  %v1019_v42 = vadd.f32 %v391_v33, %v286_v35  ;;  %v555_v58 = vmul.f32 %v547_v46, %v419_v22 }
  0xf3   : > { %v436_v34 = vadd.f32 1.0, %v428_v29  ;;  %v422_v36 = vand.u32 2147483647, %v1015_v30  ;;  %v1021_v45 = vadd.f32 %v393_v37, %v286_v35  ;;  %v1044_v62 = vmul.f32 0.5, %v388_v26 }
  0xf4   : > { %866 = vrcp.f32 %v435_v31  ;;  %v429_v38 = vmul.f32 0.3275911, %v421_v32  ;;  %v1024_v47 = vmul.f32 0.70710677, %v1019_v42  ;;  %v549_v51 = vsub.f32 0.0, %v421_v32 }
  0xf5   : > { %868 = vrcp.f32 %v436_v34  ;;  %v430_v39 = vmul.f32 0.3275911, %v422_v36  ;;  %v397_v40 = vpop.f32.mrb[6].mxu0  ;;  %v1027_v49 = vmul.f32 0.70710677, %v1021_v45  ;;  %v550_v63 = vsub.f32 0.0, %v422_v36 }
  0xf6   : > { %v437_v41 = vadd.f32 1.0, %v429_v38  ;;  %v399_v43 = vpop.f32.mrb[7].mxu0  ;;  %v423_v52 = vand.u32 2147483647, %v1024_v47  ;;  %v1030_v53 = vadd.f32 %v397_v40, %v291_v48  ;;  %v556_v3 = vmul.f32 %v548_v50, %v420_v25 }
  0xf7   : > { %v438_v44 = vadd.f32 1.0, %v430_v39  ;;  %v424_v56 = vand.u32 2147483647, %v1027_v49  ;;  %v1037_v57 = vadd.f32 %v399_v43, %v291_v48  ;;  %v557_v4 = vmul.f32 %v549_v51, %v421_v32 }
  0xf8   : > { %870 = vrcp.f32 %v437_v41  ;;  %v431_v60 = vmul.f32 0.3275911, %v423_v52  ;;  %v1042_v61 = vmul.f32 0.70710677, %v1030_v53  ;;  %v551_v9 = vsub.f32 0.0, %v423_v52 }
  0xf9   : > { %872 = vrcp.f32 %v438_v44  ;;  %v432_v0 = vmul.f32 0.3275911, %v424_v56  ;;  %v1047_v1 = vmul.f32 0.70710677, %v1037_v57  ;;  %v563_v12 = vmul.f32 1.442695, %v555_v58 }
  0xfa   : > { %v439_v5 = vadd.f32 1.0, %v431_v60  ;;  %v425_v6 = vand.u32 2147483647, %v1042_v61  ;;  %v558_v16 = vmul.f32 %v550_v63, %v422_v36  ;;  %v552_v17 = vsub.f32 0.0, %v424_v56 }
  0xfb   : > { %v440_v10 = vadd.f32 1.0, %v432_v0  ;;  %v426_v11 = vand.u32 2147483647, %v1047_v1  ;;  %v565_v22 = vmul.f32 1.442695, %v556_v3  ;;  %vm597_vm4 = vcmp.ge.f32.partialorder %v1013_v28, 0.0 }
  0xfc   : > { %874 = vrcp.f32 %v439_v5  ;;  %v433_v14 = vmul.f32 0.3275911, %v425_v6  ;;  %v567_v29 = vmul.f32 1.442695, %v557_v4  ;;  %v569_v36 = vmul.f32 1.442695, %v558_v16 }
  0xfd   : > { %876 = vrcp.f32 %v440_v10  ;;  %v434_v24 = vmul.f32 0.3275911, %v426_v11  ;;  %v560_v37 = vmul.f32 %v552_v17, %v424_v56  ;;  %v553_v38 = vsub.f32 0.0, %v425_v6 }
  0xfe   : > { %v867_v2 = vpop.eup %866  ;;  %v441_v23 = vadd.f32 1.0, %v433_v14  ;;  %v554_v48 = vsub.f32 0.0, %v426_v11  ;;  %vm598_vm5 = vcmp.ge.f32.partialorder %v1015_v30, 0.0  ;;  %vm599_vm6 = vcmp.ge.f32.partialorder %v1024_v47, 0.0 }
  0xff   : > { %v869_v7 = vpop.eup %868  ;;  %v451_v8 = vmul.f32 %v867_v2, %v435_v31  ;;  %v559_v31 = vmul.f32 %v551_v9, %v423_v52  ;;  %v573_v52 = vmul.f32 1.442695, %v560_v37  ;;  %v561_v56 = vmul.f32 %v553_v38, %v425_v6 }
 0x100   : > { %v452_v13 = vmul.f32 %v869_v7, %v436_v34  ;;  %878 = vrcp.f32 %v441_v23  ;;  %v442_v34 = vadd.f32 1.0, %v434_v24  ;;  %vm600_vm7 = vcmp.ge.f32.partialorder %v1027_v49, 0.0 }
 0x101   : > { %v459_v15 = vsub.f32 2.0, %v451_v8  ;;  %vm601_vm8 = vcmp.ge.f32.partialorder %v1042_v61, 0.0  ;;  %vm602_vm9 = vcmp.ge.f32.partialorder %v1047_v1, 0.0 }
 0x102   : > { %v871_v19 = vpop.eup %870  ;;  %v460_v21 = vsub.f32 2.0, %v452_v13  ;;  %880 = vrcp.f32 %v442_v34 }
 0x103   : > { %v873_v25 = vpop.eup %872  ;;  %v1051_v26 = vmul.f32 %v867_v2, %v459_v15  ;;  %v453_v27 = vmul.f32 %v871_v19, %v437_v41  ;;  %882 = vpow2.f32 %v563_v12  ;;  %v571_v41 = vmul.f32 1.442695, %v559_v31 }
 0x104   : > { %v1053_v32 = vmul.f32 %v869_v7, %v460_v21  ;;  %v454_v33 = vmul.f32 %v873_v25, %v438_v44  ;;  %884 = vpow2.f32 %v565_v22  ;;  %v562_v7 = vmul.f32 %v554_v48, %v426_v11 }
 0x105   : > { %v461_v35 = vsub.f32 2.0, %v453_v27  ;;  %v475_v43 = vmul.f32 1.0614054, %v1051_v26  ;;  %886 = vpow2.f32 %v567_v29  ;;  %v575_v15 = vmul.f32 1.442695, %v561_v56 }
 0x106   : > { %v462_v39 = vsub.f32 2.0, %v454_v33  ;;  %v476_v40 = vmul.f32 1.0614054, %v1053_v32  ;;  %v875_v60 = vpop.eup %874  ;;  %888 = vpow2.f32 %v569_v36 }
 0x107   : > { %v1057_v46 = vmul.f32 %v871_v19, %v461_v35  ;;  %v483_v51 = vadd.f32 -1.4531521, %v475_v43  ;;  %v877_v3 = vpop.eup %876  ;;  %v455_v4 = vmul.f32 %v875_v60, %v439_v5  ;;  %890 = vpow2.f32 %v571_v41 }
 0x108   : > { %v1059_v50 = vmul.f32 %v873_v25, %v462_v39  ;;  %v484_v44 = vadd.f32 -1.4531521, %v476_v40  ;;  %v456_v9 = vmul.f32 %v877_v3, %v440_v10  ;;  %892 = vpow2.f32 %v573_v52 }
 0x109   : > { %v477_v58 = vmul.f32 1.0614054, %v1057_v46  ;;  %v491_v2 = vmul.f32 %v483_v51, %v1051_v26  ;;  %v463_v6 = vsub.f32 2.0, %v455_v4  ;;  %v577_v10 = vmul.f32 1.442695, %v562_v7 }
 0x10a   : > { %v478_v63 = vmul.f32 1.0614054, %v1059_v50  ;;  %v492_v0 = vmul.f32 %v484_v44, %v1053_v32  ;;  %v879_v17 = vpop.eup %878  ;;  %v464_v19 = vsub.f32 2.0, %v456_v9  ;;  %894 = vpow2.f32 %v575_v15 }
 0x10b   : > { %v485_v8 = vadd.f32 -1.4531521, %v477_v58  ;;  %v499_v14 = vadd.f32 1.4214138, %v491_v2  ;;  %v1069_v24 = vmul.f32 %v875_v60, %v463_v6  ;;  %v457_v11 = vmul.f32 %v879_v17, %v441_v23 }
 0x10c   : > { %v486_v12 = vadd.f32 -1.4531521, %v478_v63  ;;  %v500_v13 = vadd.f32 1.4214138, %v492_v0  ;;  %v881_v27 = vpop.eup %880  ;;  %v1071_v29 = vmul.f32 %v877_v3, %v464_v19  ;;  %896 = vpow2.f32 %v577_v10 }
 0x10d   : > { %v493_v16 = vmul.f32 %v485_v8, %v1057_v46  ;;  %v507_v5 = vmul.f32 %v499_v14, %v1051_v26  ;;  %v883_v36 = vpop.eup %882  ;;  %v479_v37 = vmul.f32 1.0614054, %v1069_v24  ;;  %v465_v38 = vsub.f32 2.0, %v457_v11 }
 0x10e   : > { %v494_v21 = vmul.f32 %v486_v12, %v1059_v50  ;;  %v508_v22 = vmul.f32 %v500_v13, %v1053_v32  ;;  %v458_v39 = vmul.f32 %v881_v27, %v442_v34  ;;  %v885_v43 = vpop.eup %884  ;;  %v480_v41 = vmul.f32 1.0614054, %v1071_v29 }
 0x10f   : > { %v501_v25 = vadd.f32 1.4214138, %v493_v16  ;;  %v515_v35 = vadd.f32 -0.28449672, %v507_v5  ;;  %v887_v51 = vpop.eup %886  ;;  %v487_v52 = vadd.f32 -1.4531521, %v479_v37  ;;  %v1079_v56 = vmul.f32 %v879_v17, %v465_v38 }
 0x110   : > { %v502_v31 = vadd.f32 1.4214138, %v494_v21  ;;  %v516_v33 = vadd.f32 -0.28449672, %v508_v22  ;;  %v466_v58 = vsub.f32 2.0, %v458_v39  ;;  %v889_v63 = vpop.eup %888 }
 0x111   : > { %v509_v40 = vmul.f32 %v501_v25, %v1057_v46  ;;  %v523_v44 = vmul.f32 %v515_v35, %v1051_v26  ;;  %v488_v0 = vadd.f32 -1.4531521, %v480_v41  ;;  %v1081_v3 = vpop.eup %890  ;;  %v495_v4 = vmul.f32 %v487_v52, %v1069_v24 }
 0x112   : > { %v510_v23 = vmul.f32 %v502_v31, %v1059_v50  ;;  %v524_v48 = vmul.f32 %v516_v33, %v1053_v32  ;;  %v481_v7 = vmul.f32 1.0614054, %v1079_v56  ;;  %v1086_v8 = vmul.f32 %v881_v27, %v466_v58  ;;  %v893_v15 = vpop.eup %892 }
 0x113   : > { %v517_v60 = vadd.f32 -0.28449672, %v509_v40  ;;  %v496_v12 = vmul.f32 %v488_v0, %v1071_v29  ;;  %v531_v6 = vadd.f32 0.2548296, %v523_v44  ;;  %v503_v16 = vadd.f32 1.4214138, %v495_v4 }
 0x114   : > { %v518_v34 = vadd.f32 -0.28449672, %v510_v23  ;;  %v532_v2 = vadd.f32 0.2548296, %v524_v48  ;;  %v489_v17 = vadd.f32 -1.4531521, %v481_v7  ;;  %v895_v0 = vpop.eup %894 }
 0x115   : > { %v525_v9 = vmul.f32 %v517_v60, %v1057_v46  ;;  %v482_v19 = vmul.f32 1.0614054, %v1086_v8  ;;  %v504_v21 = vadd.f32 1.4214138, %v496_v12  ;;  %v511_v25 = vmul.f32 %v503_v16, %v1069_v24 }
 0x116   : > { %v526_v13 = vmul.f32 %v518_v34, %v1059_v50  ;;  %v540_v14 = vmul.f32 %v532_v2, %v1053_v32  ;;  %v497_v27 = vmul.f32 %v489_v17, %v1079_v56  ;;  %v539_v31 = vmul.f32 %v531_v6, %v1051_v26 }
 0x117   : > { %v533_v11 = vadd.f32 0.2548296, %v525_v9  ;;  %v490_v32 = vadd.f32 -1.4531521, %v482_v19  ;;  %v512_v33 = vmul.f32 %v504_v21, %v1071_v29  ;;  %v519_v38 = vadd.f32 -0.28449672, %v511_v25 }
 0x118   : > { %v534_v22 = vadd.f32 0.2548296, %v526_v13  ;;  %v580_v5 = vmul.f32 %v885_v43, %v540_v14  ;;  %v505_v39 = vadd.f32 1.4214138, %v497_v27  ;;  %v579_v43 = vmul.f32 %v883_v36, %v539_v31  ;;  %v897_v14 = vpop.eup %896 }
 0x119   : > { %v541_v37 = vmul.f32 %v533_v11, %v1057_v46  ;;  %v498_v40 = vmul.f32 %v490_v32, %v1086_v8  ;;  %v520_v41 = vadd.f32 -0.28449672, %v512_v33  ;;  %v527_v52 = vmul.f32 %v519_v38, %v1069_v24 }
 0x11a   : > { %v542_v35 = vmul.f32 %v534_v22, %v1059_v50  ;;  %v588_v10 = vsub.f32 1.0, %v580_v5  ;;  %v513_v26 = vmul.f32 %v505_v39, %v1079_v56  ;;  %v587_v60 = vsub.f32 1.0, %v579_v43 }
 0x11b   : > { %v581_v44 = vmul.f32 %v887_v51, %v541_v37  ;;  %v506_v58 = vadd.f32 1.4214138, %v498_v40  ;;  %v528_v50 = vmul.f32 %v520_v41, %v1071_v29  ;;  %v535_v4 = vadd.f32 0.2548296, %v527_v52 }
 0x11c   : > { %v582_v23 = vmul.f32 %v889_v63, %v542_v35  ;;  %v604_v48 = vsub.f32 0.0, %v588_v10  ;;  %v521_v36 = vadd.f32 -0.28449672, %v513_v26  ;;  %v603_v12 = vsub.f32 0.0, %v587_v60 }
 0x11d   : > { %v589_v2 = vsub.f32 1.0, %v581_v44  ;;  %v514_v63 = vmul.f32 %v506_v58, %v1086_v8  ;;  %v536_v51 = vadd.f32 0.2548296, %v528_v50  ;;  %v543_v6 = vmul.f32 %v535_v4, %v1069_v24 }
 0x11e   : > { %v590_v34 = vsub.f32 1.0, %v582_v23  ;;  %v612_v46 = vsel %vm596_vm2, %v588_v10, %v604_v48  ;;  %v529_v16 = vmul.f32 %v521_v36, %v1079_v56  ;;  %v611_v21 = vsel %vm595_vm3, %v587_v60, %v603_v12 }
 0x11f   : > { %v620_v7 = vadd.f32 1.0, %v612_v46  ;;  %v605_v13 = vsub.f32 0.0, %v589_v2  ;;  %v522_v17 = vadd.f32 -0.28449672, %v514_v63  ;;  %v544_v20 = vmul.f32 %v536_v51, %v1071_v29 }
 0x120   : > { %v606_v9 = vsub.f32 0.0, %v590_v34  ;;  %v583_v5 = vmul.f32 %v1081_v3, %v543_v6  ;;  %v537_v11 = vadd.f32 0.2548296, %v529_v16  ;;  %v619_v32 = vadd.f32 1.0, %v611_v21 }
 0x121   : > { %v613_v22 = vsel %vm597_vm4, %v589_v2, %v605_v13  ;;  %v530_v25 = vmul.f32 %v522_v17, %v1086_v8  ;;  %v584_v27 = vmul.f32 %v893_v15, %v544_v20  ;;  %v628_v24 = vmul.f32 %v620_v7, %v1034_v55 }
 0x122   : > { %v614_v19 = vsel %vm598_vm5, %v590_v34, %v606_v9  ;;  %v621_v31 = vadd.f32 1.0, %v613_v22  ;;  %v591_v33 = vsub.f32 1.0, %v583_v5  ;;  %v545_v29 = vmul.f32 %v537_v11, %v1079_v56 }
 0x123   : > { %v622_v30 = vadd.f32 1.0, %v614_v19  ;;  %v538_v35 = vadd.f32 0.2548296, %v530_v25  ;;  %v592_v10 = vsub.f32 1.0, %v584_v27  ;;  %v627_v28 = vmul.f32 %v619_v32, %v1032_v54 }
 0x124   : > { %v629_v3 = vmul.f32 %v621_v31, %v1039_v59  ;;  %v607_v37 = vsub.f32 0.0, %v591_v33  ;;  %v585_v38 = vmul.f32 %v895_v0, %v545_v29  ;;  %v408_v52 = vmul.f32 0.5, %v1030_v53  ;;  %v635_v53 = vld [vmem:[%s1152_s3] sm:$0xf] }
 0x125   : > { %v630_v18 = vmul.f32 %v622_v30, %v1044_v62  ;;  %v546_v39 = vmul.f32 %v538_v35, %v1086_v8  ;;  %v608_v55 = vsub.f32 0.0, %v592_v10  ;;  %v406_v8 = vmul.f32 0.5, %v1019_v42 }
 0x126   : > { %v831_v40 = vpack.c.bf16 %v629_v3, %v627_v28  ;;  %v615_v43 = vsel %vm599_vm6, %v591_v33, %v607_v37  ;;  %v593_v41 = vsub.f32 1.0, %v585_v38  ;;  %v407_v58 = vmul.f32 0.5, %v1021_v45  ;;  %v640_v45 = vpop.permute.xlu0 %639 }
 0x127   : > { %v829_v15 = vpack.c.bf16 %v630_v18, %v628_v24  ;;  %v586_v56 = vmul.f32 %v897_v14, %v546_v39  ;;  %v616_v62 = vsel %vm600_vm7, %v592_v10, %v608_v55  ;;  %v623_v59 = vadd.f32 1.0, %v615_v43 }
 0x128   : > { %v609_v54 = vsub.f32 0.0, %v593_v41  ;;  %v624_v47 = vadd.f32 1.0, %v616_v62  ;;  %v409_v50 = vmul.f32 0.5, %v1037_v57 }
 0x129   : > { %830 = vmatprep.subr.bf16.mxu1 %v829_v15  ;;  %v594_v23 = vsub.f32 1.0, %v586_v56  ;;  %v631_v60 = vmul.f32 %v623_v59, %v406_v8 }
 0x12a   : > { %832 = vmatpush1.bf16.msra.mxu1 %v831_v40  ;;  %v617_v48 = vsel %vm601_vm8, %v593_v41, %v609_v54  ;;  %v632_v61 = vmul.f32 %v624_v47, %v407_v58 }
 0x12b   : > { %v610_v44 = vsub.f32 0.0, %v594_v23  ;;  %v625_v26 = vadd.f32 1.0, %v617_v48 }
 0x12d   : > { %v618_v49 = vsel %vm602_vm9, %v594_v23, %v610_v44  ;;  %v633_v0 = vmul.f32 %v625_v26, %v408_v52 }
 0x12e   : > { %v626_v34 = vadd.f32 1.0, %v618_v49 }
 0x12f   : > { %v835_v42 = vpack.c.bf16 %v633_v0, %v631_v60 }
 0x130   : > { %v634_v46 = vmul.f32 %v626_v34, %v409_v50 }
 0x132   : > { %v833_v2 = vpack.c.bf16 %v634_v46, %v632_v61 }
 0x134   : > { %834 = vmatprep.subr.bf16.mxu1 %v833_v2 }
 0x135   : > { %836 = vmatpush1.bf16.msra.mxu1 %v835_v42 }
 0x138   : > { %824 = vmatmul.mubr.msk.f32.vlgmr.msra.gmra.mrb[0].mxu1 %vm642_vm10, %v635_v53 }
 0x20b   : > { %v712_v1 = vpop.f32.mrb[0].mxu1 }
 0x20c   : > { %v713_v4 = vadd.f32 %v712_v1, %v640_v45  ;;  %v714_v36 = vpop.f32.mrb[1].mxu1 }
 0x20d   : > { %v715_v63 = vadd.f32 %v714_v36, %v640_v45 }
 0x20f   : > { %v719_v57 = vcombine.low %v713_v4, %v715_v63 }
 0x211   : > { %721 = vst [vmem:[%s262_s28] sm:$0xff] %v719_v57 }
 0x212 PF: > { %s15_s20 = sadd.s32 1, %s920_s20   ;;  %s1155_s18 = smov %s916_s19 }
 0x213   : > { %p12_p5 = scmp.ge.s32.totalorder %s15_s20, 4   ;;  %s1156_s19 = smov %s1158_s21 }
 0x215   :  { %14 = sbr.rel (!%p12_p5) target bundleno = 2 (0x2), region = 70 }

</bundles_post_ra>
